<compile_context>
chip_gen: v6e
topology: v6e:2x2x1
jax: 0.10.0
libtpu: 0.0.40
codegen_flags: <defaults>
</compile_context>

<pallas_src>
import jax
import jax.numpy as jnp
from jax.experimental import pallas as pl
from jax.experimental.pallas import tpu as pltpu

LANE = 128
SUBLANE = 8


def _round_up(x, m):
    return (x + m - 1) // m * m


def dqn_kernel(x_ref,
               w1_ref, b1_ref,
               w2_ref, b2_ref,
               w3_ref, b3_ref,
               w4_ref, b4_ref,
               o_ref):
    """Fused forward for one batch tile:
       relu(relu(relu(x@W1+b1)@W2+b2)@W3+b3)@W4+b4.
    Matmul operands are bf16 (MXU fast path); accumulation, bias-add and ReLU
    stay in f32; the value carried between layers is bf16."""
    x = x_ref[...].astype(jnp.bfloat16)  # [TB, n_in] f32 -> bf16 in-kernel

    h = jnp.dot(x, w1_ref[...], preferred_element_type=jnp.float32) + b1_ref[...]
    h = jnp.maximum(h, 0.0).astype(jnp.bfloat16)

    h = jnp.dot(h, w2_ref[...], preferred_element_type=jnp.float32) + b2_ref[...]
    h = jnp.maximum(h, 0.0).astype(jnp.bfloat16)

    h = jnp.dot(h, w3_ref[...], preferred_element_type=jnp.float32) + b3_ref[...]
    h = jnp.maximum(h, 0.0).astype(jnp.bfloat16)

    out = jnp.dot(h, w4_ref[...], preferred_element_type=jnp.float32) + b4_ref[...]
    o_ref[...] = out.astype(o_ref.dtype)


def prepare_dqn_params(params):
    """One-time parameter prep: pad hidden dims to a lane multiple and cast
    weights to bf16.  Call once at init; reuse the result for every forward.
    Input params: (W1,b1,W2,b2,W3,b3,W4,b4) with W as [in,out], b as [1,out]."""
    (w1, b1, w2, b2, w3, b3, w4, b4) = params
    n_in, n_hidden = w1.shape
    n_out = w4.shape[1]
    n_hid_p = _round_up(n_hidden, LANE)

    def pad2(a, rows, cols, dtype):
        a = jnp.asarray(a, jnp.float32)
        a = jnp.pad(a, ((0, rows - a.shape[0]), (0, cols - a.shape[1])))
        return a.astype(dtype)

    prepared = {
        # W1 keeps its real (tiny) input dim; zero-padded hidden columns stay
        # zero through bias/ReLU so padding never leaks into real outputs.
        "w1": pad2(w1, n_in, n_hid_p, jnp.bfloat16),
        "b1": pad2(b1, 1, n_hid_p, jnp.float32),
        "w2": pad2(w2, n_hid_p, n_hid_p, jnp.bfloat16),
        "b2": pad2(b2, 1, n_hid_p, jnp.float32),
        "w3": pad2(w3, n_hid_p, n_hid_p, jnp.bfloat16),
        "b3": pad2(b3, 1, n_hid_p, jnp.float32),
        # W4 keeps its real (tiny) output dim -> un-padded output writeback.
        "w4": pad2(w4, n_hid_p, n_out, jnp.bfloat16),
        "b4": pad2(b4, 1, n_out, jnp.float32),
        "n_in": n_in,
        "n_hidden": n_hidden,
        "n_hid_p": n_hid_p,
        "n_out": n_out,
    }
    return prepared


def dqn_forward(x, prepared, *, batch_tile=4096):
    """x: [B, n_in] float32.  prepared: output of prepare_dqn_params."""
    n_in = prepared["n_in"]
    n_hid_p = prepared["n_hid_p"]
    n_out = prepared["n_out"]
    B = x.shape[0]
    assert x.shape[1] == n_in

    # Batch tiling: TB rows per grid step (multiple of 8 sublanes).  For
    # B <= batch_tile, split into >= 2 grid steps (when B >= 16) so v7x's
    # second TensorCore gets work via the "parallel" batch axis.
    if B <= batch_tile:
        if B >= 16:
            tb = _round_up((B + 1) // 2, SUBLANE)
        else:
            tb = _round_up(B, SUBLANE)
    else:
        tb = _round_up(batch_tile, SUBLANE)
    b_pad = _round_up(B, tb)
    nb = b_pad // tb

    # Only row-pad x (no lane padding, no dtype cast in the wrapper).
    x = jnp.asarray(x, jnp.float32)
    if b_pad != B:
        x_in = jnp.pad(x, ((0, b_pad - B), (0, 0)))
    else:
        x_in = x

    w1p, b1p = prepared["w1"], prepared["b1"]
    w2p, b2p = prepared["w2"], prepared["b2"]
    w3p, b3p = prepared["w3"], prepared["b3"]
    w4p, b4p = prepared["w4"], prepared["b4"]

    # Weights/biases: constant index_map -> VMEM-resident across the batch loop.
    def resident(a):
        return pl.BlockSpec(a.shape, lambda i: (0,) * a.ndim)

    # x tile spec; deepen input pipelining when there are enough grid steps.
    if nb >= 3:
        x_spec = pl.BlockSpec((tb, n_in), lambda i: (i, 0),
                              pipeline_mode=pl.Buffered(3))
    else:
        x_spec = pl.BlockSpec((tb, n_in), lambda i: (i, 0))

    # Cost estimate from real HBM traffic (un-padded x read / out write).
    flops = 2 * b_pad * (n_in * n_hid_p + 2 * n_hid_p * n_hid_p + n_hid_p * n_out)
    param_bytes = sum(int(a.size) * a.dtype.itemsize
                      for a in (w1p, b1p, w2p, b2p, w3p, b3p, w4p, b4p))
    bytes_accessed = int(b_pad * n_in * 4 + param_bytes + b_pad * n_out * 4)

    out_p = pl.pallas_call(
        dqn_kernel,
        out_shape=jax.ShapeDtypeStruct((b_pad, n_out), jnp.float32),
        grid=(nb,),
        in_specs=[x_spec,
                  resident(w1p), resident(b1p),
                  resident(w2p), resident(b2p),
                  resident(w3p), resident(b3p),
                  resident(w4p), resident(b4p)],
        out_specs=pl.BlockSpec((tb, n_out), lambda i: (i, 0)),
        compiler_params=pltpu.CompilerParams(
            dimension_semantics=("parallel",)),   # batch axis shards across TCs
        cost_estimate=pl.CostEstimate(
            flops=flops, transcendentals=0, bytes_accessed=bytes_accessed),
    )(x_in, w1p, b1p, w2p, b2p, w3p, b3p, w4p, b4p)

    # Only padded batch rows (if any) are sliced off; no column slice needed.
    return out_p[:B] if b_pad != B else out_p


def init_dqn_params(key, n_in, n_hidden, n_out):
    """Deterministic init mirroring torch.nn.Linear default (uniform +-1/sqrt(fan_in)).
    Weights stored as [in_features, out_features] (transposed vs PyTorch)."""
    dims = [(n_in, n_hidden), (n_hidden, n_hidden), (n_hidden, n_hidden), (n_hidden, n_out)]
    params = []
    for (fan_in, fan_out) in dims:
        key, kw, kb = jax.random.split(key, 3)
        bound = 1.0 / (fan_in ** 0.5)
        w = jax.random.uniform(kw, (fan_in, fan_out), jnp.float32, -bound, bound)
        b = jax.random.uniform(kb, (1, fan_out), jnp.float32, -bound, bound)
        params += [w, b]
    return tuple(params)


def dqn_reference_f32(x, params):
    """Pure-f32 reference (matches the PyTorch module's semantics)."""
    (w1, b1, w2, b2, w3, b3, w4, b4) = params
    h = jnp.maximum(x @ w1 + b1, 0.0)
    h = jnp.maximum(h @ w2 + b2, 0.0)
    h = jnp.maximum(h @ w3 + b3, 0.0)
    return h @ w4 + b4


def dqn_reference_bf16(x, params):
    """Reference matching the kernel's numerics: bf16 matmul operands, f32 accum."""
    (w1, b1, w2, b2, w3, b3, w4, b4) = params
    bf = jnp.bfloat16

    def dot(a, w):
        return jnp.dot(a.astype(bf), w.astype(bf), preferred_element_type=jnp.float32)

    h = jnp.maximum(dot(x, w1) + b1, 0.0)
    h = jnp.maximum(dot(h, w2) + b2, 0.0)
    h = jnp.maximum(dot(h, w3) + b3, 0.0)
    return dot(h, w4) + b4


if __name__ == "__main__":
    # Small shapes consistent with a DQN over a low-dim observation (e.g. CartPole).
    B, n_in, n_hidden, n_out = 8, 4, 32, 2

    key = jax.random.PRNGKey(0)
    key, kx = jax.random.split(key)
    x = jax.random.normal(kx, (B, n_in), jnp.float32)

    params = init_dqn_params(key, n_in, n_hidden, n_out)
    prepared = prepare_dqn_params(params)      # one-time param prep (padding + bf16)

    out = dqn_forward(x, prepared)
    out = jax.block_until_ready(out)
    assert out.shape == (B, n_out), out.shape

    # Strict check vs a reference using identical bf16-operand / f32-accum math.
    ref_bf16 = dqn_reference_bf16(x, params)
    assert jnp.allclose(out, ref_bf16, atol=2e-3, rtol=2e-3), "mismatch vs bf16 reference"

    # Loose semantic check vs the full-f32 PyTorch-equivalent forward.
    ref_f32 = dqn_reference_f32(x, params)
    assert jnp.allclose(out, ref_f32, atol=5e-2, rtol=5e-2), "mismatch vs f32 reference"

    print("KERNEL_OK")
</pallas_src>

<mosaic_0001>
module attributes {stable_mosaic.version = 11 : i64} {
  func.func @dqn_kernel(%arg0: i32, %arg1: memref<8x4xf32, #tpu.memory_space<vmem>>, %arg2: memref<4x128xbf16, #tpu.memory_space<vmem>>, %arg3: memref<1x128xf32, #tpu.memory_space<vmem>>, %arg4: memref<128x128xbf16, #tpu.memory_space<vmem>>, %arg5: memref<1x128xf32, #tpu.memory_space<vmem>>, %arg6: memref<128x128xbf16, #tpu.memory_space<vmem>>, %arg7: memref<1x128xf32, #tpu.memory_space<vmem>>, %arg8: memref<128x2xbf16, #tpu.memory_space<vmem>>, %arg9: memref<1x2xf32, #tpu.memory_space<vmem>>, %arg10: memref<8x2xf32, #tpu.memory_space<vmem>>) attributes {dimension_semantics = [#tpu.dimension_semantics<parallel>], iteration_bounds = array<i64: 1>, scalar_prefetch = 0 : i64, scratch_operands = 0 : i64, tpu.core_type = #tpu.core_type<tc>, window_params = [{transform_indices = @transform_0, window_bounds = array<i64: 8, 4>}, {pipeline_mode = #tpu.pipeline_mode<synchronous>, transform_indices = @transform_1, window_bounds = array<i64: 4, 128>}, {pipeline_mode = #tpu.pipeline_mode<synchronous>, transform_indices = @transform_2, window_bounds = array<i64: 1, 128>}, {pipeline_mode = #tpu.pipeline_mode<synchronous>, transform_indices = @transform_3, window_bounds = array<i64: 128, 128>}, {pipeline_mode = #tpu.pipeline_mode<synchronous>, transform_indices = @transform_4, window_bounds = array<i64: 1, 128>}, {pipeline_mode = #tpu.pipeline_mode<synchronous>, transform_indices = @transform_5, window_bounds = array<i64: 128, 128>}, {pipeline_mode = #tpu.pipeline_mode<synchronous>, transform_indices = @transform_6, window_bounds = array<i64: 1, 128>}, {pipeline_mode = #tpu.pipeline_mode<synchronous>, transform_indices = @transform_7, window_bounds = array<i64: 128, 2>}, {pipeline_mode = #tpu.pipeline_mode<synchronous>, transform_indices = @transform_8, window_bounds = array<i64: 1, 2>}, {transform_indices = @transform_9, window_bounds = array<i64: 8, 2>}]} {
    %c0 = arith.constant 0 : index
    %c0_0 = arith.constant 0 : index
    %0 = vector.load %arg1[%c0, %c0_0] : memref<8x4xf32, #tpu.memory_space<vmem>>, vector<8x4xf32>
    %1 = arith.truncf %0 : vector<8x4xf32> to vector<8x4xbf16>
    %c0_1 = arith.constant 0 : index
    %c0_2 = arith.constant 0 : index
    %2 = vector.load %arg2[%c0_1, %c0_2] : memref<4x128xbf16, #tpu.memory_space<vmem>>, vector<4x128xbf16>
    %cst = arith.constant dense<0.000000e+00> : vector<8x128xf32>
    %3 = tpu.matmul %1, %2, %cst {dimension_numbers = #tpu.dot_dimension_numbers<[1], [0], [0], [1], [0, 0, 1, 1], [], []>} : vector<8x4xbf16>, vector<4x128xbf16>, vector<8x128xf32> -> vector<8x128xf32>
    %c0_3 = arith.constant 0 : index
    %c0_4 = arith.constant 0 : index
    %4 = vector.load %arg3[%c0_3, %c0_4] : memref<1x128xf32, #tpu.memory_space<vmem>>, vector<1x128xf32>
    %5 = vector.broadcast %4 : vector<1x128xf32> to vector<8x128xf32>
    %6 = arith.addf %3, %5 : vector<8x128xf32>
    %cst_5 = arith.constant 0.000000e+00 : f32
    %7 = vector.broadcast %cst_5 : f32 to vector<8x128xf32>
    %8 = arith.maximumf %6, %7 : vector<8x128xf32>
    %9 = arith.truncf %8 : vector<8x128xf32> to vector<8x128xbf16>
    %c0_6 = arith.constant 0 : index
    %c0_7 = arith.constant 0 : index
    %10 = vector.load %arg4[%c0_6, %c0_7] : memref<128x128xbf16, #tpu.memory_space<vmem>>, vector<128x128xbf16>
    %cst_8 = arith.constant dense<0.000000e+00> : vector<8x128xf32>
    %11 = tpu.matmul %9, %10, %cst_8 {dimension_numbers = #tpu.dot_dimension_numbers<[1], [0], [0], [1], [0, 0, 1, 1], [], []>} : vector<8x128xbf16>, vector<128x128xbf16>, vector<8x128xf32> -> vector<8x128xf32>
    %c0_9 = arith.constant 0 : index
    %c0_10 = arith.constant 0 : index
    %12 = vector.load %arg5[%c0_9, %c0_10] : memref<1x128xf32, #tpu.memory_space<vmem>>, vector<1x128xf32>
    %13 = vector.broadcast %12 : vector<1x128xf32> to vector<8x128xf32>
    %14 = arith.addf %11, %13 : vector<8x128xf32>
    %cst_11 = arith.constant 0.000000e+00 : f32
    %15 = vector.broadcast %cst_11 : f32 to vector<8x128xf32>
    %16 = arith.maximumf %14, %15 : vector<8x128xf32>
    %17 = arith.truncf %16 : vector<8x128xf32> to vector<8x128xbf16>
    %c0_12 = arith.constant 0 : index
    %c0_13 = arith.constant 0 : index
    %18 = vector.load %arg6[%c0_12, %c0_13] : memref<128x128xbf16, #tpu.memory_space<vmem>>, vector<128x128xbf16>
    %cst_14 = arith.constant dense<0.000000e+00> : vector<8x128xf32>
    %19 = tpu.matmul %17, %18, %cst_14 {dimension_numbers = #tpu.dot_dimension_numbers<[1], [0], [0], [1], [0, 0, 1, 1], [], []>} : vector<8x128xbf16>, vector<128x128xbf16>, vector<8x128xf32> -> vector<8x128xf32>
    %c0_15 = arith.constant 0 : index
    %c0_16 = arith.constant 0 : index
    %20 = vector.load %arg7[%c0_15, %c0_16] : memref<1x128xf32, #tpu.memory_space<vmem>>, vector<1x128xf32>
    %21 = vector.broadcast %20 : vector<1x128xf32> to vector<8x128xf32>
    %22 = arith.addf %19, %21 : vector<8x128xf32>
    %cst_17 = arith.constant 0.000000e+00 : f32
    %23 = vector.broadcast %cst_17 : f32 to vector<8x128xf32>
    %24 = arith.maximumf %22, %23 : vector<8x128xf32>
    %25 = arith.truncf %24 : vector<8x128xf32> to vector<8x128xbf16>
    %c0_18 = arith.constant 0 : index
    %c0_19 = arith.constant 0 : index
    %26 = vector.load %arg8[%c0_18, %c0_19] : memref<128x2xbf16, #tpu.memory_space<vmem>>, vector<128x2xbf16>
    %cst_20 = arith.constant dense<0.000000e+00> : vector<8x2xf32>
    %27 = tpu.matmul %25, %26, %cst_20 {dimension_numbers = #tpu.dot_dimension_numbers<[1], [0], [0], [1], [0, 0, 1, 1], [], []>} : vector<8x128xbf16>, vector<128x2xbf16>, vector<8x2xf32> -> vector<8x2xf32>
    %c0_21 = arith.constant 0 : index
    %c0_22 = arith.constant 0 : index
    %28 = vector.load %arg9[%c0_21, %c0_22] : memref<1x2xf32, #tpu.memory_space<vmem>>, vector<1x2xf32>
    %29 = vector.broadcast %28 : vector<1x2xf32> to vector<8x2xf32>
    %30 = arith.addf %27, %29 : vector<8x2xf32>
    %c0_23 = arith.constant 0 : index
    %c0_24 = arith.constant 0 : index
    %31 = vector.load %arg10[%c0_23, %c0_24] : memref<8x2xf32, #tpu.memory_space<vmem>>, vector<8x2xf32>
    tpu.vector_store %arg10[%c0_23, %c0_24], %30 {strides = array<i32>} : memref<8x2xf32, #tpu.memory_space<vmem>>, vector<8x2xf32>,
    return
  }
  func.func @transform_0(%arg0: i32) -> (i32, i32) {
    %c0_i32 = arith.constant 0 : i32
    %c0_i32_0 = arith.constant 0 : i32
    return %arg0, %c0_i32 : i32, i32
  }
  func.func @transform_1(%arg0: i32) -> (i32, i32) {
    %c0_i32 = arith.constant 0 : i32
    %c0_i32_0 = arith.constant 0 : i32
    %c0_i32_1 = arith.constant 0 : i32
    return %c0_i32, %c0_i32_0 : i32, i32
  }
  func.func @transform_2(%arg0: i32) -> (i32, i32) {
    %c0_i32 = arith.constant 0 : i32
    %c0_i32_0 = arith.constant 0 : i32
    %c0_i32_1 = arith.constant 0 : i32
    return %c0_i32, %c0_i32_0 : i32, i32
  }
  func.func @transform_3(%arg0: i32) -> (i32, i32) {
    %c0_i32 = arith.constant 0 : i32
    %c0_i32_0 = arith.constant 0 : i32
    %c0_i32_1 = arith.constant 0 : i32
    return %c0_i32, %c0_i32_0 : i32, i32
  }
  func.func @transform_4(%arg0: i32) -> (i32, i32) {
    %c0_i32 = arith.constant 0 : i32
    %c0_i32_0 = arith.constant 0 : i32
    %c0_i32_1 = arith.constant 0 : i32
    return %c0_i32, %c0_i32_0 : i32, i32
  }
  func.func @transform_5(%arg0: i32) -> (i32, i32) {
    %c0_i32 = arith.constant 0 : i32
    %c0_i32_0 = arith.constant 0 : i32
    %c0_i32_1 = arith.constant 0 : i32
    return %c0_i32, %c0_i32_0 : i32, i32
  }
  func.func @transform_6(%arg0: i32) -> (i32, i32) {
    %c0_i32 = arith.constant 0 : i32
    %c0_i32_0 = arith.constant 0 : i32
    %c0_i32_1 = arith.constant 0 : i32
    return %c0_i32, %c0_i32_0 : i32, i32
  }
  func.func @transform_7(%arg0: i32) -> (i32, i32) {
    %c0_i32 = arith.constant 0 : i32
    %c0_i32_0 = arith.constant 0 : i32
    %c0_i32_1 = arith.constant 0 : i32
    return %c0_i32, %c0_i32_0 : i32, i32
  }
  func.func @transform_8(%arg0: i32) -> (i32, i32) {
    %c0_i32 = arith.constant 0 : i32
    %c0_i32_0 = arith.constant 0 : i32
    %c0_i32_1 = arith.constant 0 : i32
    return %c0_i32, %c0_i32_0 : i32, i32
  }
  func.func @transform_9(%arg0: i32) -> (i32, i32) {
    %c0_i32 = arith.constant 0 : i32
    %c0_i32_0 = arith.constant 0 : i32
    return %arg0, %c0_i32 : i32, i32
  }
}

</mosaic_0001>

<bundles_post_ra>
// kernel: tpu_custom_call.1
= control target key start
LH: loop header
LB: loop body
LE: loop exit
PB: predicated region body
PF: predicated region fallthrough
CT: control target
= control target key end

     0   :  { %14 = vsyncpa [#allocation3], 0  ;;  %s626_s30 = smov [#allocation2]   ;;  %s786_s0 = inlined_call_operand.vmem [shape: f32[8,4], index: 0, kind: input, shape index: {}]   ;;  %s787_s1 = inlined_call_operand.vmem [shape: bf16[4,128], index: 1, kind: input, shape index: {}]   ;;  %s788_s2 = inlined_call_operand.vmem [shape: f32[1,128], index: 2, kind: input, shape index: {}]   ;;  %s789_s3 = inlined_call_operand.vmem [shape: bf16[128,128], index: 3, kind: input, shape index: {}]   ;;  %s790_s4 = inlined_call_operand.vmem [shape: f32[1,128], index: 4, kind: input, shape index: {}]   ;;  %s791_s5 = inlined_call_operand.hbm [shape: bf16[128,128], index: 5, kind: input, shape index: {}]   ;;  %s792_s6 = inlined_call_operand.vmem [shape: f32[1,128], index: 6, kind: input, shape index: {}]   ;;  %s793_s7 = inlined_call_operand.vmem [shape: bf16[128,2], index: 7, kind: input, shape index: {}]   ;;  %s794_s8 = inlined_call_operand.vmem [shape: f32[1,2], index: 8, kind: input, shape index: {}]   ;;  %s795_s9 = inlined_call_operand.vmem [shape: f32[8,2], index: 9, kind: output, shape index: {}]  }
   0x1   :  { %s30_s10 = sshll.u32 %s626_s30, 4  ;;  %s31_s10 = int_to_ptr.vmem [resolvable:$true] %s30_s10 }
   0x2   :  { %s612_s11 = scalar_lea.vmem %s31_s10, 1024  ;;  %p617_p1 = scmp.lt.s32.totalorder %s31_s10, %s31_s10 }
   0x3   :  { %p613_p0 = scmp.ne.s32.totalorder %s31_s10, %s612_s11  ;;  %p618_p2 = scmp.lt.s32.totalorder %s612_s11, %s612_s11 }
   0x5   :  { %p619_p3 = por %p618_p2, %p617_p1 }
   0x7   :  { %p620_p4 = pnand %p619_p3, %p613_p0 }
   0x9   :  { %623 = shalt.err (!%p620_p4)
}
   0xa   :  { %s627_s12 = smov 64   ;;  %s628_s13 = smov 4  }
   0xb   :  { %36 = dma.hbm_to_vmem [thread:$0]  %s791_s5, 1024, %s31_s10, [#allocation3], %s627_s12, %s627_s12, %s628_s13  }
   0xc   :  { %624 = dma.done.wait [#allocation3], 1024  }
   0xd   :  { %625 = vsyncadd [#allocation3], 4294966272  ;;  %v629_v0 = vmov 0.0   ;;  %vm630_vm0 = vmmov 0   ;;  %vm61_vm1 = vcmask 1041408   ;;  %v47_v2 = vld [vmem:[%s786_s0] sm:$0xff] }
   0xe   :  { %509 = vmatprep.subr.bf16.mxu0 %v629_v0  ;;  %511 = vmatprep.mubr.msk.bf16.mxu0 %vm630_vm0, %v629_v0  ;;  %v49_v1 = vld [vmem:[%s787_s1] sm:$0x3]  ;;  %v48_v4 = vpack.c.bf16 %v47_v2, %v47_v2  ;;  %v580_v5 = vld [vmem:[%s789_s3 + $0x38] sm:$0xff]   ;;  %vm57_vm2 = vcmask 31744   ;;  %v581_v6 = vld [vmem:[%s789_s3 + $0x30] sm:$0xff]   ;;  %vm444_vm3 = vcmask 15360  }
   0xf   :  { %515 = vmatprep.subr.bf16.mxu1 %v629_v0  ;;  %531 = vmatprep.mubr.msk.bf16.mxu1 %vm630_vm0, %v629_v0  ;;  %v63_v3 = vsel %vm61_vm1, %v49_v1, 0  ;;  %v582_v7 = vld [vmem:[%s789_s3 + $0x28] sm:$0xff]   ;;  %v583_v8 = vld [vmem:[%s789_s3 + $0x20] sm:$0xff]   ;;  %v584_v9 = vld [vmem:[%s789_s3 + $0x18] sm:$0xff]  }
  0x10   :  { %510 = vmatpush3.bf16.msra.mxu0 %v63_v3  ;;  %516 = vmatpush3.bf16.msra.mxu1 %v580_v5  ;;  %v585_v10 = vld [vmem:[%s789_s3 + $0x10] sm:$0xff]   ;;  %v586_v11 = vld [vmem:[%s789_s3 + $0x8] sm:$0xff]   ;;  %v587_v12 = vld [vmem:[%s789_s3] sm:$0xff]  }
  0x11   :  { %535 = vmatprep.subr.bf16.mxu0 %v629_v0  ;;  %517 = vmatprep.subr.bf16.mxu1 %v629_v0  ;;  %v588_v13 = vld [vmem:[#allocation2 + $0x38] sm:$0xff]   ;;  %v589_v14 = vld [vmem:[#allocation2 + $0x30] sm:$0xff]   ;;  %v590_v15 = vld [vmem:[#allocation2 + $0x28] sm:$0xff]  }
  0x12   :  { %v591_v16 = vld [vmem:[#allocation2 + $0x20] sm:$0xff]   ;;  %v592_v17 = vld [vmem:[#allocation2 + $0x18] sm:$0xff]   ;;  %v593_v18 = vld [vmem:[#allocation2 + $0x10] sm:$0xff]  }
  0x13   :  { %512 = vmatmul.mubr.msk.bf16.vlgmr.msra.gmra.mxu0 %vm57_vm2, %v48_v4  ;;  %v451_v19 = vld [vmem:[%s788_s2] ss:$0 sm:$0xff]  ;;  %v594_v27 = vld [vmem:[#allocation2 + $0x8] sm:$0xff]   ;;  %v596_v29 = vld [vmem:[%s793_s7 + $0x38] sm:$0xff]  }
  0x14   :  { %551 = vmatprep.mubr.msk.bf16.mxu0 %vm630_vm0, %v629_v0  ;;  %518 = vmatpush3.bf16.msra.mxu1 %v581_v6  ;;  %v595_v28 = vld [vmem:[#allocation2] sm:$0xff]   ;;  %v597_v30 = vld [vmem:[%s793_s7 + $0x30] sm:$0xff]   ;;  %v598_v31 = vld [vmem:[%s793_s7 + $0x28] sm:$0xff]  }
  0x15   :  { %519 = vmatprep.subr.bf16.mxu1 %v629_v0  ;;  %536 = vmatpush3.bf16.msra.mxu0 %v588_v13  ;;  %v599_v32 = vld [vmem:[%s793_s7 + $0x20] sm:$0xff]   ;;  %v600_v33 = vld [vmem:[%s793_s7 + $0x18] sm:$0xff]   ;;  %v601_v34 = vld [vmem:[%s793_s7 + $0x10] sm:$0xff]  }
  0x16   :  { %537 = vmatprep.subr.bf16.mxu0 %v629_v0  ;;  %v453_v35 = vld [vmem:[%s790_s4] ss:$0 sm:$0xff]  ;;  %v602_v43 = vld [vmem:[%s793_s7 + $0x8] sm:$0xff]  }
  0x17   :  { %v603_v44 = vld [vmem:[%s793_s7] sm:$0xff]  }
  0x18   :  { %520 = vmatpush3.bf16.msra.mxu1 %v582_v7  ;;  %v462_v45 = vld [vmem:[%s792_s6] ss:$0 sm:$0xff] }
  0x19   :  { %521 = vmatprep.subr.bf16.mxu1 %v629_v0  ;;  %538 = vmatpush3.bf16.msra.mxu0 %v589_v14  ;;  %v471_v53 = vld [vmem:[%s794_s8] ss:$0 sm:$0xff] }
  0x1a   :  { %539 = vmatprep.subr.bf16.mxu0 %v629_v0 }
  0x1c   :  { %522 = vmatpush3.bf16.msra.mxu1 %v583_v8 }
  0x1d   :  { %523 = vmatprep.subr.bf16.mxu1 %v629_v0  ;;  %540 = vmatpush3.bf16.msra.mxu0 %v590_v15 }
  0x1e   :  { %541 = vmatprep.subr.bf16.mxu0 %v629_v0 }
  0x20   :  { %524 = vmatpush3.bf16.msra.mxu1 %v584_v9 }
  0x21   :  { %525 = vmatprep.subr.bf16.mxu1 %v629_v0  ;;  %542 = vmatpush3.bf16.msra.mxu0 %v591_v16 }
  0x22   :  { %543 = vmatprep.subr.bf16.mxu0 %v629_v0 }
  0x24   :  { %526 = vmatpush3.bf16.msra.mxu1 %v585_v10 }
  0x25   :  { %527 = vmatprep.subr.bf16.mxu1 %v629_v0  ;;  %544 = vmatpush3.bf16.msra.mxu0 %v592_v17 }
  0x26   :  { %545 = vmatprep.subr.bf16.mxu0 %v629_v0 }
  0x28   :  { %528 = vmatpush3.bf16.msra.mxu1 %v586_v11 }
  0x29   :  { %529 = vmatprep.subr.bf16.mxu1 %v629_v0  ;;  %546 = vmatpush3.bf16.msra.mxu0 %v593_v18 }
  0x2a   :  { %547 = vmatprep.subr.bf16.mxu0 %v629_v0 }
  0x2c   :  { %530 = vmatpush3.bf16.msra.mxu1 %v587_v12 }
  0x2d   :  { %555 = vmatprep.subr.bf16.mxu1 %v629_v0  ;;  %548 = vmatpush3.bf16.msra.mxu0 %v594_v27 }
  0x2e   :  { %549 = vmatprep.subr.bf16.mxu0 %v629_v0 }
  0x31   :  { %550 = vmatpush3.bf16.msra.mxu0 %v595_v28 }
  0xd3   :  { %v99_v20 = vpop.f32.mrf.mxu0 }
  0xd4   :  { %v100_v21 = vadd.f32 %v451_v19, %v99_v20 }
  0xd5   :  { %v513_v22 = vpop.f32.mrf.mxu0 }
  0xd6   :  { %v105_v23 = vmax.f32 %v100_v21, 0.0 }
  0xd7   :  { %v102_v24 = vpop.f32.mrf.mxu0 }
  0xd8   :  { %v106_v25 = vpack.c.bf16 %v105_v23, %v105_v23 }
  0xd9   :  { %v514_v26 = vpop.f32.mrf.mxu0 }
  0xda   :  { %532 = vmatmul.mubr.bf16.vlgmr.msra.gmra.mxu1 %v106_v25 }
  0xdb   :  { %571 = vmatprep.mubr.msk.bf16.mxu1 %vm630_vm0, %v629_v0  ;;  %556 = vmatpush3.bf16.msra.mxu1 %v596_v29 }
  0xdc   :  { %557 = vmatprep.subr.bf16.mxu1 %v629_v0 }
  0xdf   :  { %558 = vmatpush3.bf16.msra.mxu1 %v597_v30 }
  0xe0   :  { %559 = vmatprep.subr.bf16.mxu1 %v629_v0 }
  0xe3   :  { %560 = vmatpush3.bf16.msra.mxu1 %v598_v31 }
  0xe4   :  { %561 = vmatprep.subr.bf16.mxu1 %v629_v0 }
  0xe7   :  { %562 = vmatpush3.bf16.msra.mxu1 %v599_v32 }
  0xe8   :  { %563 = vmatprep.subr.bf16.mxu1 %v629_v0 }
  0xeb   :  { %564 = vmatpush3.bf16.msra.mxu1 %v600_v33 }
  0xec   :  { %565 = vmatprep.subr.bf16.mxu1 %v629_v0 }
  0xef   :  { %566 = vmatpush3.bf16.msra.mxu1 %v601_v34 }
  0xf0   :  { %567 = vmatprep.subr.bf16.mxu1 %v629_v0 }
  0xf3   :  { %568 = vmatpush3.bf16.msra.mxu1 %v602_v43 }
  0xf4   :  { %569 = vmatprep.subr.bf16.mxu1 %v629_v0 }
  0xf7   :  { %570 = vmatpush3.bf16.msra.mxu1 %v603_v44 }
 0x19a   :  { %v212_v36 = vpop.f32.mrf.mxu1 }
 0x19b   :  { %v213_v37 = vadd.f32 %v453_v35, %v212_v36 }
 0x19c   :  { %v533_v38 = vpop.f32.mrf.mxu1 }
 0x19d   :  { %v218_v39 = vmax.f32 %v213_v37, 0.0 }
 0x19e   :  { %v215_v40 = vpop.f32.mrf.mxu1 }
 0x19f   :  { %v219_v41 = vpack.c.bf16 %v218_v39, %v218_v39 }
 0x1a0   :  { %v534_v42 = vpop.f32.mrf.mxu1 }
 0x1a1   :  { %552 = vmatmul.mubr.bf16.vlgmr.msra.gmra.mxu0 %v219_v41 }
 0x261   :  { %v325_v46 = vpop.f32.mrf.mxu0 }
 0x262   :  { %v326_v47 = vadd.f32 %v462_v45, %v325_v46 }
 0x263   :  { %v553_v48 = vpop.f32.mrf.mxu0 }
 0x264   :  { %v331_v49 = vmax.f32 %v326_v47, 0.0 }
 0x265   :  { %v328_v50 = vpop.f32.mrf.mxu0 }
 0x266   :  { %v332_v51 = vpack.c.bf16 %v331_v49, %v331_v49 }
 0x267   :  { %v554_v52 = vpop.f32.mrf.mxu0 }
 0x268   :  { %572 = vmatmul.mubr.bf16.vlgmr.msra.gmra.mxu1 %v332_v51 }
 0x328   :  { %v438_v54 = vpop.f32.mrf.mxu1 }
 0x329   :  { %v439_v55 = vadd.f32 %v471_v53, %v438_v54 }
 0x32a   :  { %v573_v56 = vpop.f32.mrf.mxu1 }
 0x32b   :  { %445 = vst.msk [vmem:[%s795_s9] sm:$0xff] %vm444_vm3, %v439_v55 }
 0x32c   :  { %v441_v57 = vpop.f32.mrf.mxu1 }
 0x32e   :  { %v574_v58 = vpop.f32.mrf.mxu1 }
 0x32f   :  { %450 = vsyncpa [#allocation3], 1 }

</bundles_post_ra>
